<compile_context>
chip_gen: v5e
topology: v5e:2x2
jax: 0.10.0
libtpu: 0.0.40
codegen_flags: <defaults>
</compile_context>

<pallas_src>
import functools

import jax
import jax.numpy as jnp
from jax import lax
from jax.experimental import pallas as pl
from jax.experimental.pallas import tpu as pltpu


def lm_criterion_kernel(inp_ref, tgt_ref, out_ref, *, slab_rows, acc_lanes):
    s = pl.program_id(1)  # inner reduction axis

    @pl.when(s == 0)
    def _():
        out_ref[...] = jnp.zeros_like(out_ref)

    tile_rows, V = inp_ref.shape
    n_slabs = tile_rows // slab_rows
    lane_groups = V // acc_lanes

    # Column iota is loop-invariant: computed once per grid step, reused for
    # every slab (amortized ~1/n_slabs VALU ops per element).
    col = lax.broadcasted_iota(jnp.int32, (slab_rows, V), 1)

    def slab_body(i, acc):
        r = pl.multiple_of(i * slab_rows, slab_rows)
        x = inp_ref[pl.ds(r, slab_rows), :]          # (slab, V), native dtype
        t = tgt_ref[pl.ds(r, slab_rows), :]          # (slab, 1), int32
        # Fused one-hot gather.  Invalid / padded / overhang rows carry
        # target == -1 and never match; select (not multiply) means garbage in
        # padded input rows is harmless.
        sel = jnp.where(col == t, x, 0)
        # Fold lane groups in the native dtype (exact: <=1 nonzero per row),
        # then upcast only the small (slab, acc_lanes) chunk and fold sublane
        # groups in f32.  Pure lane/sublane-aligned vreg adds, no XLU.
        folded = sel.reshape(slab_rows, lane_groups, acc_lanes).sum(axis=1)
        folded = folded.astype(jnp.float32)
        return acc + folded.reshape(slab_rows // 8, 8, acc_lanes).sum(axis=0)

    acc = lax.fori_loop(0, n_slabs, slab_body,
                        jnp.zeros((8, acc_lanes), jnp.float32),
                        unroll=min(8, n_slabs))
    out_ref[...] += acc


def _default_num_parallel():
    # 2 TensorCores per chip on v7x, 1 on v5e/v6e.
    try:
        kind = jax.devices()[0].device_kind.lower()
        return 2 if "v7" in kind else 1
    except Exception:
        return 1


def lm_criterion(inp, target, *, num_parallel=None, max_tile_rows=None,
                 vmem_budget_per_buffer=None, vmem_limit_bytes=None,
                 slab_budget_bytes=512 * 1024):
    """Masked NLL loss: -sum(inp[r, target[r]] for rows r with target[r] > 0).

    inp: (N, V) float32 / bfloat16 log-probs.  target: (N, 1) integer indices.
    """
    N, V = inp.shape
    assert target.shape == (N, 1)
    itemsize = jnp.dtype(inp.dtype).itemsize

    # Accumulator lane width: a single (8, 128) f32 tile when V tiles cleanly.
    acc_lanes = 128 if V % 128 == 0 else V

    # ---- Generation-aware VMEM budgets ---------------------------------
    if vmem_budget_per_buffer is None or vmem_limit_bytes is None:
        try:
            vmem_cap = int(pltpu.get_tpu_info().vmem_capacity_bytes)
        except Exception:
            vmem_cap = 64 * 1024 * 1024                 # assume the tightest (v7x)
        if vmem_cap >= 100 * 1024 * 1024:               # v5e / v6e: 128 MiB
            budget_d, limit_d = 24 * 1024 * 1024, 80 * 1024 * 1024
        else:                                           # v7x: 64 MiB
            budget_d, limit_d = 14 * 1024 * 1024, 48 * 1024 * 1024
        if vmem_budget_per_buffer is None:
            vmem_budget_per_buffer = budget_d
        if vmem_limit_bytes is None:
            vmem_limit_bytes = limit_d

    if num_parallel is None:
        num_parallel = _default_num_parallel()

    # ---- Row tiling: sized purely by the byte budget (no row cap) -------
    # Per streamed row in VMEM: V*itemsize log-probs + a lane-padded (1->128)
    # int32 target row.
    vmem_bytes_per_row = V * itemsize + 128 * 4
    n_rows8 = -(-N // 8) * 8
    tile_rows = max(8, (vmem_budget_per_buffer // vmem_bytes_per_row) // 8 * 8)
    tile_rows = int(min(tile_rows, n_rows8))
    if max_tile_rows is not None:
        tile_rows = min(tile_rows, max(8, max_tile_rows // 8 * 8))

    # Inner slab: bounds live temporaries to ~slab_budget_bytes.
    slab_rows = max(8, min(tile_rows, (slab_budget_bytes // (V * itemsize)) // 8 * 8))
    tile_rows = max(slab_rows, tile_rows // slab_rows * slab_rows)

    total_blocks = -(-N // tile_rows)
    num_parallel = max(1, min(int(num_parallel), total_blocks))
    steps = -(-total_blocks // num_parallel)
    padded_rows = num_parallel * steps * tile_rows
    last_block = total_blocks - 1

    # ---- Target prep: fold validity into the indices, pad ONLY target ---
    target = target.astype(jnp.int32)
    target = jnp.where(target > 0, target, -1)          # invalid -> never matches
    if padded_rows != N:
        target = jnp.pad(target, ((0, padded_rows - N), (0, 0)), constant_values=-1)

    # Guard huge-V configs: the double-buffered streamed blocks must fit.
    need = 2 * tile_rows * vmem_bytes_per_row + 2 * 1024 * 1024
    vmem_limit_bytes = int(max(vmem_limit_bytes, need))

    kernel = functools.partial(lm_criterion_kernel,
                               slab_rows=slab_rows, acc_lanes=acc_lanes)

    partials = pl.pallas_call(
        kernel,
        out_shape=jax.ShapeDtypeStruct((num_parallel * 8, acc_lanes), jnp.float32),
        grid_spec=pltpu.PrefetchScalarGridSpec(
            num_scalar_prefetch=0,
            grid=(num_parallel, steps),
            in_specs=[
                # Input is NOT padded: clamp the block index so any grid slot
                # past the last real block re-reads that block; its targets are
                # the padded -1 rows, so it adds exactly zero.
                pl.BlockSpec((tile_rows, V),
                             lambda p, s: (jnp.minimum(p * steps + s, last_block), 0)),
                pl.BlockSpec((tile_rows, 1), lambda p, s: (p * steps + s, 0)),
            ],
            out_specs=pl.BlockSpec((8, acc_lanes), lambda p, s: (p, 0)),
        ),
        compiler_params=pltpu.CompilerParams(
            dimension_semantics=("parallel", "arbitrary"),
            vmem_limit_bytes=vmem_limit_bytes,
        ),
    )(inp, target)

    # Tiny final reduction over (num_parallel*8, acc_lanes) partial sums.
    return -jnp.sum(partials)


def lm_criterion_ref(inp, target):
    gathered = jnp.take_along_axis(inp.astype(jnp.float32), target, axis=1)  # (N, 1)
    mask = target > 0
    return -jnp.sum(jnp.where(mask, gathered, 0.0))


if __name__ == "__main__":
    key = jax.random.PRNGKey(0)
    k1, k2, k3, k4, k5, k6 = jax.random.split(key, 6)

    # --- Case 1: small, aligned shapes ----------------------------------
    N, V = 16, 128
    logprobs = jax.nn.log_softmax(jax.random.normal(k1, (N, V), jnp.float32), axis=-1)
    target = jax.random.randint(k2, (N, 1), 0, V, dtype=jnp.int32)
    target = target.at[0, 0].set(0).at[5, 0].set(0)      # exercise the mask path
    loss = jax.block_until_ready(lm_criterion(logprobs, target))
    ref = jax.block_until_ready(lm_criterion_ref(logprobs, target))
    assert jnp.allclose(loss, ref, rtol=1e-5, atol=1e-5), (loss, ref)

    # --- Case 2: ragged N, 2 "parallel" super-blocks, multi-step grid,
    #             clamped tail block + padded(-1) targets, multi-slab loop ----
    N2, V2 = 100, 256
    logprobs2 = jax.nn.log_softmax(jax.random.normal(k3, (N2, V2), jnp.float32), axis=-1)
    target2 = jax.random.randint(k4, (N2, 1), 0, V2, dtype=jnp.int32)
    target2 = target2.at[3, 0].set(0).at[77, 0].set(0)
    loss2 = jax.block_until_ready(
        lm_criterion(logprobs2, target2, num_parallel=2,
                     max_tile_rows=40, slab_budget_bytes=8 * 1024))
    ref2 = jax.block_until_ready(lm_criterion_ref(logprobs2, target2))
    assert jnp.allclose(loss2, ref2, rtol=1e-5, atol=1e-5), (loss2, ref2)

    # --- Case 3: bf16 log-probs (packed native-dtype select path) --------
    N3, V3 = 64, 384
    lp3 = jax.nn.log_softmax(jax.random.normal(k5, (N3, V3), jnp.float32), axis=-1)
    lp3 = lp3.astype(jnp.bfloat16)
    target3 = jax.random.randint(k6, (N3, 1), 0, V3, dtype=jnp.int32)
    target3 = target3.at[10, 0].set(0)
    loss3 = jax.block_until_ready(lm_criterion(lp3, target3))
    ref3 = jax.block_until_ready(lm_criterion_ref(lp3, target3))
    assert jnp.allclose(loss3, ref3, rtol=1e-4, atol=1e-3), (loss3, ref3)

    print("KERNEL_OK")
</pallas_src>

<mosaic_0001>
module attributes {stable_mosaic.version = 11 : i64} {
  func.func @lm_criterion_kernel(%arg0: i32, %arg1: i32, %arg2: memref<16x128xf32, #tpu.memory_space<vmem>>, %arg3: memref<16x1xi32, #tpu.memory_space<vmem>>, %arg4: memref<8x128xf32, #tpu.memory_space<vmem>>) attributes {dimension_semantics = [#tpu.dimension_semantics<parallel>, #tpu.dimension_semantics<arbitrary>], iteration_bounds = array<i64: 1, 1>, scalar_prefetch = 0 : i64, scratch_operands = 0 : i64, tpu.core_type = #tpu.core_type<tc>, window_params = [{transform_indices = @transform_0, window_bounds = array<i64: 16, 128>}, {transform_indices = @transform_1, window_bounds = array<i64: 16, 1>}, {transform_indices = @transform_2, window_bounds = array<i64: 8, 128>}]} {
    %c0_i32 = arith.constant 0 : i32
    %0 = arith.cmpi eq, %arg1, %c0_i32 : i32
    %1 = arith.extui %0 : i1 to i32
    %c0_i32_0 = arith.constant 0 : i32
    %2 = arith.cmpi ne, %1, %c0_i32_0 : i32
    scf.if %2 {
      %cst_10 = arith.constant 0.000000e+00 : f32
      %24 = vector.broadcast %cst_10 : f32 to vector<8x128xf32>
      %c0_11 = arith.constant 0 : index
      %c0_12 = arith.constant 0 : index
      %25 = vector.load %arg4[%c0_11, %c0_12] : memref<8x128xf32, #tpu.memory_space<vmem>>, vector<8x128xf32>
      tpu.vector_store %arg4[%c0_11, %c0_12], %24 {strides = array<i32>} : memref<8x128xf32, #tpu.memory_space<vmem>>, vector<8x128xf32>,
    } else {
    }
    %3 = tpu.iota {dimensions = array<i32: 1>} : vector<16x128xi32>
    %cst = arith.constant 0.000000e+00 : f32
    %4 = vector.broadcast %cst : f32 to vector<8x128xf32>
    %c0_i32_1 = arith.constant 0 : i32
    %c16_i32 = arith.constant 16 : i32
    %5 = arith.muli %c0_i32_1, %c16_i32 : i32
    %6 = tpu.assume_multiple %5, 16 : i32
    %7 = arith.index_cast %6 : i32 to index
    %c0 = arith.constant 0 : index
    %8 = vector.load %arg2[%7, %c0] : memref<16x128xf32, #tpu.memory_space<vmem>>, vector<16x128xf32>
    %9 = arith.index_cast %6 : i32 to index
    %c0_2 = arith.constant 0 : index
    %10 = vector.load %arg3[%9, %c0_2] : memref<16x1xi32, #tpu.memory_space<vmem>>, vector<16x1xi32>
    %11 = vector.broadcast %10 : vector<16x1xi32> to vector<16x128xi32>
    %12 = arith.cmpi eq, %3, %11 : vector<16x128xi32>
    %c0_i32_3 = arith.constant 0 : i32
    %13 = arith.sitofp %c0_i32_3 : i32 to f32
    %14 = vector.broadcast %13 : f32 to vector<16x128xf32>
    %15 = arith.select %12, %8, %14 : vector<16x128xi1>, vector<16x128xf32>
    %16 = vector.shape_cast %15 : vector<16x128xf32> to vector<16x1x128xf32>
    %cst_4 = arith.constant dense<0.000000e+00> : vector<16x128xf32>
    %17 = vector.multi_reduction <add>, %16, %cst_4 [1] : vector<16x1x128xf32> to vector<16x128xf32>
    %18 = vector.shape_cast %17 : vector<16x128xf32> to vector<2x8x128xf32>
    %cst_5 = arith.constant dense<0.000000e+00> : vector<8x128xf32>
    %19 = vector.multi_reduction <add>, %18, %cst_5 [0] : vector<2x8x128xf32> to vector<8x128xf32>
    %20 = arith.addf %4, %19 : vector<8x128xf32>
    %c1_i32 = arith.constant 1 : i32
    %c0_6 = arith.constant 0 : index
    %c0_7 = arith.constant 0 : index
    %21 = vector.load %arg4[%c0_6, %c0_7] : memref<8x128xf32, #tpu.memory_space<vmem>>, vector<8x128xf32>
    %22 = arith.addf %21, %20 : vector<8x128xf32>
    %c0_8 = arith.constant 0 : index
    %c0_9 = arith.constant 0 : index
    %23 = vector.load %arg4[%c0_8, %c0_9] : memref<8x128xf32, #tpu.memory_space<vmem>>, vector<8x128xf32>
    tpu.vector_store %arg4[%c0_8, %c0_9], %22 {strides = array<i32>} : memref<8x128xf32, #tpu.memory_space<vmem>>, vector<8x128xf32>,
    return
  }
  func.func @transform_0(%arg0: i32, %arg1: i32) -> (i32, i32) {
    %c1_i32 = arith.constant 1 : i32
    %0 = arith.muli %arg0, %c1_i32 : i32
    %1 = arith.addi %0, %arg1 : i32
    %c0_i32 = arith.constant 0 : i32
    %2 = arith.minsi %1, %c0_i32 : i32
    %c0_i32_0 = arith.constant 0 : i32
    %c0_i32_1 = arith.constant 0 : i32
    return %2, %c0_i32_0 : i32, i32
  }
  func.func @transform_1(%arg0: i32, %arg1: i32) -> (i32, i32) {
    %c1_i32 = arith.constant 1 : i32
    %0 = arith.muli %arg0, %c1_i32 : i32
    %1 = arith.addi %0, %arg1 : i32
    %c0_i32 = arith.constant 0 : i32
    %c0_i32_0 = arith.constant 0 : i32
    return %1, %c0_i32 : i32, i32
  }
  func.func @transform_2(%arg0: i32, %arg1: i32) -> (i32, i32) {
    %c0_i32 = arith.constant 0 : i32
    %c0_i32_0 = arith.constant 0 : i32
    return %arg0, %c0_i32 : i32, i32
  }
}

</mosaic_0001>

<bundles_post_ra>
// kernel: tpu_custom_call.1
= control target key start
LH: loop header
LB: loop body
LE: loop exit
PB: predicated region body
PF: predicated region fallthrough
CT: control target
= control target key end

     0   :  { %s184_s0 = inlined_call_operand.vmem [shape: f32[16,128], index: 0, kind: input, shape index: {}]   ;;  %s185_s1 = inlined_call_operand.vmem [shape: s32[16,1], index: 1, kind: input, shape index: {}]   ;;  %s186_s2 = inlined_call_operand.hbm [shape: f32[8,128], index: 2, kind: output, shape index: {}]  }
   0x1   :  { %v75_v0 = vld [vmem:[%s185_s1] sm:$0xff] }
   0x2   :  { %7 = vsyncpa [#allocation3], 0  ;;  %v152_v1 = vmov 0   ;;  %v76_v2 = vld [vmem:[%s185_s1 + $0x8] sm:$0xff]  ;;  %v71_v3 = vlaneseq  ;;  %v73_v6 = vld [vmem:[%s184_s0] sm:$0xff]  ;;  %s153_s17 = smov [#allocation2]  }
   0x3   :  { %125 = vset.pattern.permute.xlu0 %v152_v1  ;;  %v74_v7 = vld [vmem:[%s184_s0 + $0x8] sm:$0xff]  ;;  %s99_s18 = sshll.u32 %s153_s17, 4  ;;  %s101_s20 = sshll.u32 %s186_s2, 4  ;;  %s100_s18 = int_to_ptr.vmem [resolvable:$true] %s99_s18  ;;  %s102_s20 = int_to_ptr.hbm [resolvable:$true] %s101_s20 }
   0x4   :  { %78 = vperm.xlu0 %125, %v75_v0   ;;  %v72_v5 = vand.u32 127, %v71_v3 }
   0xc   :  { %81 = vperm.xlu0 %125, %v76_v2  }
  0x76   :  { %v79_v4 = vpop.permute.xlu0 %78 }
  0x77   :  { %vm83_vm0 = vcmp.eq.s32.totalorder %v72_v5, %v79_v4 }
  0x78   :  { %v85_v9 = vsel %vm83_vm0, %v73_v6, 0.0 }
  0x7e   :  { %v82_v8 = vpop.permute.xlu0 %81 }
  0x7f   :  { %vm84_vm1 = vcmp.eq.s32.totalorder %v72_v5, %v82_v8 }
  0x80   :  { %v86_v10 = vsel %vm84_vm1, %v74_v7, 0.0 }
  0x81   :  { %v89_v11 = vadd.f32 %v86_v10, %v85_v9 }
  0x83   :  { %93 = vst [vmem:[#allocation2] sm:$0xff] %v89_v11 }
  0x84   :  { %104 = dma.vmem_to_hbm [thread:$0]  %s100_s18, 128, %s102_s20, [#allocation3]  }
  0x85   :  { %150 = dma.done.wait [#allocation3], 128  }
  0x86   :  { %151 = vsyncadd [#allocation3], 4294967168 }
  0x87   :  { %109 = vsyncpa [#allocation3], 1 }

</bundles_post_ra>
